<compile_context>
chip_gen: v7x
topology: tpu7x:2x2x1
jax: 0.10.0
libtpu: 0.0.40
codegen_flags: <defaults>
</compile_context>

<pallas_src>
import functools

import jax
import jax.numpy as jnp
from jax import lax
from jax.experimental import pallas as pl
from jax.experimental.pallas import tpu as pltpu

_NEG_BIG = -1e30  # finite "minus infinity" for padded softmax lanes


def _rnn_seq_kernel(xw_ref, h0_ref, wch_ref, wo_ref, bo_ref,
                    out_ref, hid_ref, y_scratch, *,
                    seq_len, batch, hidden_size):
    """Single-invocation kernel: whole sequence, recurrence via unrolled fori_loop.

    xw_ref   : (T, B, H+O)  precomputed x_t @ W_x + fused bias (hoisted GEMM)
    h0_ref   : (B, H)       initial hidden state
    wch_ref  : (H, H+O)     hidden half of the fused i2h/i2o weight
    wo_ref   : (H+O, O_pad) o2o weight, zero-padded to 128 output lanes
    bo_ref   : (1, O_pad)   o2o bias, -1e30 on padded lanes
    out_ref  : (T, B, O_pad) per-step log-probs (lane-dense store)
    hid_ref  : (B, H)        final hidden state
    y_scratch: (T, B, H+O)   stashed pre-o2o activations
    """

    def step(t, h):
        # Per-step serial chain is a single small (B,H)x(H,H+O) MXU dot;
        # y == cat([hidden', output], dim=1) of the reference module.
        y = xw_ref[t] + jnp.dot(h, wch_ref[...],
                                preferred_element_type=jnp.float32)
        y_scratch[t] = y                  # stash for the batched o2o below
        return y[:, :hidden_size]         # == i2h(combined): next hidden state

    h_final = lax.fori_loop(0, seq_len, step, h0_ref[...], unroll=True)
    hid_ref[...] = h_final

    # Stage-2 (off the recurrent critical path): one batched o2o GEMM over all
    # timesteps, then one batched log-softmax.  Padded weight columns are zero
    # and padded bias lanes are -1e30, so they are inert in the softmax.
    y_all = y_scratch[...].reshape(seq_len * batch, y_scratch.shape[-1])
    logits = (jnp.dot(y_all, wo_ref[...], preferred_element_type=jnp.float32)
              + bo_ref[...])                                   # (T*B, O_pad)

    # dropout(p=0.1): identity in eval/inference mode.
    # TODO(synk): training-mode dropout (pltpu.stateful_bernoulli) not emitted.

    m = jnp.max(logits, axis=1, keepdims=True)
    shifted = logits - m
    lse = jnp.log(jnp.sum(jnp.exp(shifted), axis=1, keepdims=True))
    out_ref[...] = (shifted - lse).reshape(seq_len, batch, logits.shape[1])


def _pack_params(params, input_size, out_pad):
    """Fuse i2h/i2o along the output axis, split along the input axis,
    and lane-pad o2o to `out_pad` columns."""
    I = input_size
    wc = jnp.concatenate([params["w_i2h"], params["w_i2o"]], axis=1)  # (I+H, H+O)
    bc = jnp.concatenate([params["b_i2h"], params["b_i2o"]], axis=1)  # (1, H+O)
    wcx, wch = wc[:I, :], wc[I:, :]
    O = params["w_o2o"].shape[1]
    pad = out_pad - O
    wo = jnp.pad(params["w_o2o"], ((0, 0), (0, pad)))
    bo = jnp.pad(params["b_o2o"], ((0, 0), (0, pad)), constant_values=_NEG_BIG)
    return wcx, wch, bc, wo, bo


@jax.jit
def rnn_sequence_forward(x_seq, h0, params):
    """x_seq: (T, B, input_size), h0: (B, hidden_size).
    Returns (log_probs (T, B, output_size), final_hidden (B, hidden_size))."""
    T, B, I = x_seq.shape
    H = params["w_i2h"].shape[1]
    O = params["w_i2o"].shape[1]
    HO = H + O
    O_pad = ((O + 127) // 128) * 128

    wcx, wch, bc, wo, bo = _pack_params(params, I, O_pad)

    # Hoist the input projection out of the recurrence: one (T*B, I)x(I, H+O)
    # GEMM in XLA with the fused bias folded in.
    xw = (x_seq.reshape(T * B, I) @ wcx + bc).reshape(T, B, HO)

    kernel = functools.partial(_rnn_seq_kernel,
                               seq_len=T, batch=B, hidden_size=H)

    out_pad_seq, hid = pl.pallas_call(
        kernel,
        # No grid: single invocation; all operands/outputs whole-array resident
        # in VMEM (total footprint ~70 KiB, fine on v5e/v6e/v7x).
        out_shape=(
            jax.ShapeDtypeStruct((T, B, O_pad), jnp.float32),  # per-step log-probs
            jax.ShapeDtypeStruct((B, H), jnp.float32),         # final hidden
        ),
        scratch_shapes=[pltpu.VMEM((T, B, HO), jnp.float32)],  # stashed y_t
    )(xw, h0, wch, wo, bo)

    return out_pad_seq[:, :, :O], hid


def rnn_cell_forward(x, h, params):
    """Single-step forward matching the PyTorch module signature."""
    out_seq, hid = rnn_sequence_forward(x[None], h, params)
    return out_seq[0], hid


def init_params(key, input_size, hidden_size, output_size):
    """Deterministic PyTorch-Linear-style init. Weights stored transposed: (in, out)."""
    ks = jax.random.split(key, 6)

    def linear(kw, kb, fan_in, fan_out):
        bound = 1.0 / jnp.sqrt(jnp.float32(fan_in))
        w = jax.random.uniform(kw, (fan_in, fan_out), jnp.float32, -bound, bound)
        b = jax.random.uniform(kb, (1, fan_out), jnp.float32, -bound, bound)
        return w, b

    w_i2h, b_i2h = linear(ks[0], ks[1], input_size + hidden_size, hidden_size)
    w_i2o, b_i2o = linear(ks[2], ks[3], input_size + hidden_size, output_size)
    w_o2o, b_o2o = linear(ks[4], ks[5], hidden_size + output_size, output_size)
    return dict(w_i2h=w_i2h, b_i2h=b_i2h,
                w_i2o=w_i2o, b_i2o=b_i2o,
                w_o2o=w_o2o, b_o2o=b_o2o)


def reference_forward(x, h, p):
    """Pure-JAX single-step reference (original, unfused parameter layout)."""
    combined = jnp.concatenate([x, h], axis=1)
    hidden_new = combined @ p["w_i2h"] + p["b_i2h"]
    output = combined @ p["w_i2o"] + p["b_i2o"]
    out = jnp.concatenate([hidden_new, output], axis=1) @ p["w_o2o"] + p["b_o2o"]
    return jax.nn.log_softmax(out, axis=1), hidden_new


if __name__ == "__main__":
    input_size, hidden_size, output_size = 16, 32, 16
    batch, seq_len = 8, 8          # batch filled to one full f32 sublane tile

    key = jax.random.PRNGKey(0)
    k_x, k_p = jax.random.split(key)
    x_seq = jax.random.normal(k_x, (seq_len, batch, input_size), jnp.float32)
    h0 = jnp.zeros((batch, hidden_size), jnp.float32)   # initHidden-style zeros
    params = init_params(k_p, input_size, hidden_size, output_size)

    # Kernel: whole sequence in one pallas_call invocation.
    out_seq, h_final = rnn_sequence_forward(x_seq, h0, params)
    out_seq, h_final = jax.block_until_ready((out_seq, h_final))

    # Pure-JAX reference: unrolled step-by-step.
    ref_outs, h_ref = [], h0
    for t in range(seq_len):
        o_t, h_ref = reference_forward(x_seq[t], h_ref, params)
        ref_outs.append(o_t)
    ref_outs = jnp.stack(ref_outs)

    assert out_seq.shape == (seq_len, batch, output_size), "bad output shape"
    assert jnp.allclose(out_seq, ref_outs, atol=1e-4, rtol=1e-4), "sequence output mismatch"
    assert jnp.allclose(h_final, h_ref, atol=1e-4, rtol=1e-4), "final hidden mismatch"

    # Single-step path (original PyTorch forward signature).
    out1, h1 = rnn_cell_forward(x_seq[0], h0, params)
    r1, rh1 = reference_forward(x_seq[0], h0, params)
    assert jnp.allclose(out1, r1, atol=1e-4, rtol=1e-4), "single-step output mismatch"
    assert jnp.allclose(h1, rh1, atol=1e-4, rtol=1e-4), "single-step hidden mismatch"

    print("KERNEL_OK")
</pallas_src>

<mosaic_0001>
module attributes {stable_mosaic.version = 11 : i64} {
  func.func @_rnn_seq_kernel(%arg0: memref<8x8x48xf32, #tpu.memory_space<vmem>>, %arg1: memref<8x32xf32, #tpu.memory_space<vmem>>, %arg2: memref<32x48xf32, #tpu.memory_space<vmem>>, %arg3: memref<48x128xf32, #tpu.memory_space<vmem>>, %arg4: memref<1x128xf32, #tpu.memory_space<vmem>>, %arg5: memref<8x8x128xf32, #tpu.memory_space<vmem>>, %arg6: memref<8x32xf32, #tpu.memory_space<vmem>>, %arg7: memref<8x8x48xf32, #tpu.memory_space<vmem>>) attributes {dimension_semantics = [], scalar_prefetch = 0 : i64, scratch_operands = 1 : i64, tpu.core_type = #tpu.core_type<tc>} {
    %c0 = arith.constant 0 : index
    %c0_0 = arith.constant 0 : index
    %0 = vector.load %arg1[%c0, %c0_0] : memref<8x32xf32, #tpu.memory_space<vmem>>, vector<8x32xf32>
    %c0_i32 = arith.constant 0 : i32
    %1 = arith.index_cast %c0_i32 : i32 to index
    %c0_1 = arith.constant 0 : index
    %c0_2 = arith.constant 0 : index
    %2 = vector.load %arg0[%1, %c0_1, %c0_2] : memref<8x8x48xf32, #tpu.memory_space<vmem>>, vector<1x8x48xf32>
    %3 = vector.shape_cast %2 : vector<1x8x48xf32> to vector<8x48xf32>
    %c0_3 = arith.constant 0 : index
    %c0_4 = arith.constant 0 : index
    %4 = vector.load %arg2[%c0_3, %c0_4] : memref<32x48xf32, #tpu.memory_space<vmem>>, vector<32x48xf32>
    %cst = arith.constant dense<0.000000e+00> : vector<8x48xf32>
    %5 = tpu.matmul %0, %4, %cst {dimension_numbers = #tpu.dot_dimension_numbers<[1], [0], [0], [1], [0, 0, 1, 1], [], []>} : vector<8x32xf32>, vector<32x48xf32>, vector<8x48xf32> -> vector<8x48xf32>
    %6 = arith.addf %3, %5 : vector<8x48xf32>
    %7 = arith.index_cast %c0_i32 : i32 to index
    %c0_5 = arith.constant 0 : index
    %c0_6 = arith.constant 0 : index
    %8 = vector.load %arg7[%7, %c0_5, %c0_6] : memref<8x8x48xf32, #tpu.memory_space<vmem>>, vector<1x8x48xf32>
    %9 = vector.shape_cast %8 : vector<1x8x48xf32> to vector<8x48xf32>
    %10 = vector.shape_cast %6 : vector<8x48xf32> to vector<1x8x48xf32>
    tpu.vector_store %arg7[%7, %c0_5, %c0_6], %10 {strides = array<i32>} : memref<8x8x48xf32, #tpu.memory_space<vmem>>, vector<1x8x48xf32>,
    %11 = vector.extract_strided_slice %6 {offsets = [0, 0], sizes = [8, 32], strides = [1, 1]} : vector<8x48xf32> to vector<8x32xf32>
    %c1_i32 = arith.constant 1 : i32
    %12 = arith.index_cast %c1_i32 : i32 to index
    %c0_7 = arith.constant 0 : index
    %c0_8 = arith.constant 0 : index
    %13 = vector.load %arg0[%12, %c0_7, %c0_8] : memref<8x8x48xf32, #tpu.memory_space<vmem>>, vector<1x8x48xf32>
    %14 = vector.shape_cast %13 : vector<1x8x48xf32> to vector<8x48xf32>
    %c0_9 = arith.constant 0 : index
    %c0_10 = arith.constant 0 : index
    %15 = vector.load %arg2[%c0_9, %c0_10] : memref<32x48xf32, #tpu.memory_space<vmem>>, vector<32x48xf32>
    %cst_11 = arith.constant dense<0.000000e+00> : vector<8x48xf32>
    %16 = tpu.matmul %11, %15, %cst_11 {dimension_numbers = #tpu.dot_dimension_numbers<[1], [0], [0], [1], [0, 0, 1, 1], [], []>} : vector<8x32xf32>, vector<32x48xf32>, vector<8x48xf32> -> vector<8x48xf32>
    %17 = arith.addf %14, %16 : vector<8x48xf32>
    %18 = arith.index_cast %c1_i32 : i32 to index
    %c0_12 = arith.constant 0 : index
    %c0_13 = arith.constant 0 : index
    %19 = vector.load %arg7[%18, %c0_12, %c0_13] : memref<8x8x48xf32, #tpu.memory_space<vmem>>, vector<1x8x48xf32>
    %20 = vector.shape_cast %19 : vector<1x8x48xf32> to vector<8x48xf32>
    %21 = vector.shape_cast %17 : vector<8x48xf32> to vector<1x8x48xf32>
    tpu.vector_store %arg7[%18, %c0_12, %c0_13], %21 {strides = array<i32>} : memref<8x8x48xf32, #tpu.memory_space<vmem>>, vector<1x8x48xf32>,
    %22 = vector.extract_strided_slice %17 {offsets = [0, 0], sizes = [8, 32], strides = [1, 1]} : vector<8x48xf32> to vector<8x32xf32>
    %c2_i32 = arith.constant 2 : i32
    %23 = arith.index_cast %c2_i32 : i32 to index
    %c0_14 = arith.constant 0 : index
    %c0_15 = arith.constant 0 : index
    %24 = vector.load %arg0[%23, %c0_14, %c0_15] : memref<8x8x48xf32, #tpu.memory_space<vmem>>, vector<1x8x48xf32>
    %25 = vector.shape_cast %24 : vector<1x8x48xf32> to vector<8x48xf32>
    %c0_16 = arith.constant 0 : index
    %c0_17 = arith.constant 0 : index
    %26 = vector.load %arg2[%c0_16, %c0_17] : memref<32x48xf32, #tpu.memory_space<vmem>>, vector<32x48xf32>
    %cst_18 = arith.constant dense<0.000000e+00> : vector<8x48xf32>
    %27 = tpu.matmul %22, %26, %cst_18 {dimension_numbers = #tpu.dot_dimension_numbers<[1], [0], [0], [1], [0, 0, 1, 1], [], []>} : vector<8x32xf32>, vector<32x48xf32>, vector<8x48xf32> -> vector<8x48xf32>
    %28 = arith.addf %25, %27 : vector<8x48xf32>
    %29 = arith.index_cast %c2_i32 : i32 to index
    %c0_19 = arith.constant 0 : index
    %c0_20 = arith.constant 0 : index
    %30 = vector.load %arg7[%29, %c0_19, %c0_20] : memref<8x8x48xf32, #tpu.memory_space<vmem>>, vector<1x8x48xf32>
    %31 = vector.shape_cast %30 : vector<1x8x48xf32> to vector<8x48xf32>
    %32 = vector.shape_cast %28 : vector<8x48xf32> to vector<1x8x48xf32>
    tpu.vector_store %arg7[%29, %c0_19, %c0_20], %32 {strides = array<i32>} : memref<8x8x48xf32, #tpu.memory_space<vmem>>, vector<1x8x48xf32>,
    %33 = vector.extract_strided_slice %28 {offsets = [0, 0], sizes = [8, 32], strides = [1, 1]} : vector<8x48xf32> to vector<8x32xf32>
    %c3_i32 = arith.constant 3 : i32
    %34 = arith.index_cast %c3_i32 : i32 to index
    %c0_21 = arith.constant 0 : index
    %c0_22 = arith.constant 0 : index
    %35 = vector.load %arg0[%34, %c0_21, %c0_22] : memref<8x8x48xf32, #tpu.memory_space<vmem>>, vector<1x8x48xf32>
    %36 = vector.shape_cast %35 : vector<1x8x48xf32> to vector<8x48xf32>
    %c0_23 = arith.constant 0 : index
    %c0_24 = arith.constant 0 : index
    %37 = vector.load %arg2[%c0_23, %c0_24] : memref<32x48xf32, #tpu.memory_space<vmem>>, vector<32x48xf32>
    %cst_25 = arith.constant dense<0.000000e+00> : vector<8x48xf32>
    %38 = tpu.matmul %33, %37, %cst_25 {dimension_numbers = #tpu.dot_dimension_numbers<[1], [0], [0], [1], [0, 0, 1, 1], [], []>} : vector<8x32xf32>, vector<32x48xf32>, vector<8x48xf32> -> vector<8x48xf32>
    %39 = arith.addf %36, %38 : vector<8x48xf32>
    %40 = arith.index_cast %c3_i32 : i32 to index
    %c0_26 = arith.constant 0 : index
    %c0_27 = arith.constant 0 : index
    %41 = vector.load %arg7[%40, %c0_26, %c0_27] : memref<8x8x48xf32, #tpu.memory_space<vmem>>, vector<1x8x48xf32>
    %42 = vector.shape_cast %41 : vector<1x8x48xf32> to vector<8x48xf32>
    %43 = vector.shape_cast %39 : vector<8x48xf32> to vector<1x8x48xf32>
    tpu.vector_store %arg7[%40, %c0_26, %c0_27], %43 {strides = array<i32>} : memref<8x8x48xf32, #tpu.memory_space<vmem>>, vector<1x8x48xf32>,
    %44 = vector.extract_strided_slice %39 {offsets = [0, 0], sizes = [8, 32], strides = [1, 1]} : vector<8x48xf32> to vector<8x32xf32>
    %c4_i32 = arith.constant 4 : i32
    %45 = arith.index_cast %c4_i32 : i32 to index
    %c0_28 = arith.constant 0 : index
    %c0_29 = arith.constant 0 : index
    %46 = vector.load %arg0[%45, %c0_28, %c0_29] : memref<8x8x48xf32, #tpu.memory_space<vmem>>, vector<1x8x48xf32>
    %47 = vector.shape_cast %46 : vector<1x8x48xf32> to vector<8x48xf32>
    %c0_30 = arith.constant 0 : index
    %c0_31 = arith.constant 0 : index
    %48 = vector.load %arg2[%c0_30, %c0_31] : memref<32x48xf32, #tpu.memory_space<vmem>>, vector<32x48xf32>
    %cst_32 = arith.constant dense<0.000000e+00> : vector<8x48xf32>
    %49 = tpu.matmul %44, %48, %cst_32 {dimension_numbers = #tpu.dot_dimension_numbers<[1], [0], [0], [1], [0, 0, 1, 1], [], []>} : vector<8x32xf32>, vector<32x48xf32>, vector<8x48xf32> -> vector<8x48xf32>
    %50 = arith.addf %47, %49 : vector<8x48xf32>
    %51 = arith.index_cast %c4_i32 : i32 to index
    %c0_33 = arith.constant 0 : index
    %c0_34 = arith.constant 0 : index
    %52 = vector.load %arg7[%51, %c0_33, %c0_34] : memref<8x8x48xf32, #tpu.memory_space<vmem>>, vector<1x8x48xf32>
    %53 = vector.shape_cast %52 : vector<1x8x48xf32> to vector<8x48xf32>
    %54 = vector.shape_cast %50 : vector<8x48xf32> to vector<1x8x48xf32>
    tpu.vector_store %arg7[%51, %c0_33, %c0_34], %54 {strides = array<i32>} : memref<8x8x48xf32, #tpu.memory_space<vmem>>, vector<1x8x48xf32>,
    %55 = vector.extract_strided_slice %50 {offsets = [0, 0], sizes = [8, 32], strides = [1, 1]} : vector<8x48xf32> to vector<8x32xf32>
    %c5_i32 = arith.constant 5 : i32
    %56 = arith.index_cast %c5_i32 : i32 to index
    %c0_35 = arith.constant 0 : index
    %c0_36 = arith.constant 0 : index
    %57 = vector.load %arg0[%56, %c0_35, %c0_36] : memref<8x8x48xf32, #tpu.memory_space<vmem>>, vector<1x8x48xf32>
    %58 = vector.shape_cast %57 : vector<1x8x48xf32> to vector<8x48xf32>
    %c0_37 = arith.constant 0 : index
    %c0_38 = arith.constant 0 : index
    %59 = vector.load %arg2[%c0_37, %c0_38] : memref<32x48xf32, #tpu.memory_space<vmem>>, vector<32x48xf32>
    %cst_39 = arith.constant dense<0.000000e+00> : vector<8x48xf32>
    %60 = tpu.matmul %55, %59, %cst_39 {dimension_numbers = #tpu.dot_dimension_numbers<[1], [0], [0], [1], [0, 0, 1, 1], [], []>} : vector<8x32xf32>, vector<32x48xf32>, vector<8x48xf32> -> vector<8x48xf32>
    %61 = arith.addf %58, %60 : vector<8x48xf32>
    %62 = arith.index_cast %c5_i32 : i32 to index
    %c0_40 = arith.constant 0 : index
    %c0_41 = arith.constant 0 : index
    %63 = vector.load %arg7[%62, %c0_40, %c0_41] : memref<8x8x48xf32, #tpu.memory_space<vmem>>, vector<1x8x48xf32>
    %64 = vector.shape_cast %63 : vector<1x8x48xf32> to vector<8x48xf32>
    %65 = vector.shape_cast %61 : vector<8x48xf32> to vector<1x8x48xf32>
    tpu.vector_store %arg7[%62, %c0_40, %c0_41], %65 {strides = array<i32>} : memref<8x8x48xf32, #tpu.memory_space<vmem>>, vector<1x8x48xf32>,
    %66 = vector.extract_strided_slice %61 {offsets = [0, 0], sizes = [8, 32], strides = [1, 1]} : vector<8x48xf32> to vector<8x32xf32>
    %c6_i32 = arith.constant 6 : i32
    %67 = arith.index_cast %c6_i32 : i32 to index
    %c0_42 = arith.constant 0 : index
    %c0_43 = arith.constant 0 : index
    %68 = vector.load %arg0[%67, %c0_42, %c0_43] : memref<8x8x48xf32, #tpu.memory_space<vmem>>, vector<1x8x48xf32>
    %69 = vector.shape_cast %68 : vector<1x8x48xf32> to vector<8x48xf32>
    %c0_44 = arith.constant 0 : index
    %c0_45 = arith.constant 0 : index
    %70 = vector.load %arg2[%c0_44, %c0_45] : memref<32x48xf32, #tpu.memory_space<vmem>>, vector<32x48xf32>
    %cst_46 = arith.constant dense<0.000000e+00> : vector<8x48xf32>
    %71 = tpu.matmul %66, %70, %cst_46 {dimension_numbers = #tpu.dot_dimension_numbers<[1], [0], [0], [1], [0, 0, 1, 1], [], []>} : vector<8x32xf32>, vector<32x48xf32>, vector<8x48xf32> -> vector<8x48xf32>
    %72 = arith.addf %69, %71 : vector<8x48xf32>
    %73 = arith.index_cast %c6_i32 : i32 to index
    %c0_47 = arith.constant 0 : index
    %c0_48 = arith.constant 0 : index
    %74 = vector.load %arg7[%73, %c0_47, %c0_48] : memref<8x8x48xf32, #tpu.memory_space<vmem>>, vector<1x8x48xf32>
    %75 = vector.shape_cast %74 : vector<1x8x48xf32> to vector<8x48xf32>
    %76 = vector.shape_cast %72 : vector<8x48xf32> to vector<1x8x48xf32>
    tpu.vector_store %arg7[%73, %c0_47, %c0_48], %76 {strides = array<i32>} : memref<8x8x48xf32, #tpu.memory_space<vmem>>, vector<1x8x48xf32>,
    %77 = vector.extract_strided_slice %72 {offsets = [0, 0], sizes = [8, 32], strides = [1, 1]} : vector<8x48xf32> to vector<8x32xf32>
    %c7_i32 = arith.constant 7 : i32
    %78 = arith.index_cast %c7_i32 : i32 to index
    %c0_49 = arith.constant 0 : index
    %c0_50 = arith.constant 0 : index
    %79 = vector.load %arg0[%78, %c0_49, %c0_50] : memref<8x8x48xf32, #tpu.memory_space<vmem>>, vector<1x8x48xf32>
    %80 = vector.shape_cast %79 : vector<1x8x48xf32> to vector<8x48xf32>
    %c0_51 = arith.constant 0 : index
    %c0_52 = arith.constant 0 : index
    %81 = vector.load %arg2[%c0_51, %c0_52] : memref<32x48xf32, #tpu.memory_space<vmem>>, vector<32x48xf32>
    %cst_53 = arith.constant dense<0.000000e+00> : vector<8x48xf32>
    %82 = tpu.matmul %77, %81, %cst_53 {dimension_numbers = #tpu.dot_dimension_numbers<[1], [0], [0], [1], [0, 0, 1, 1], [], []>} : vector<8x32xf32>, vector<32x48xf32>, vector<8x48xf32> -> vector<8x48xf32>
    %83 = arith.addf %80, %82 : vector<8x48xf32>
    %84 = arith.index_cast %c7_i32 : i32 to index
    %c0_54 = arith.constant 0 : index
    %c0_55 = arith.constant 0 : index
    %85 = vector.load %arg7[%84, %c0_54, %c0_55] : memref<8x8x48xf32, #tpu.memory_space<vmem>>, vector<1x8x48xf32>
    %86 = vector.shape_cast %85 : vector<1x8x48xf32> to vector<8x48xf32>
    %87 = vector.shape_cast %83 : vector<8x48xf32> to vector<1x8x48xf32>
    tpu.vector_store %arg7[%84, %c0_54, %c0_55], %87 {strides = array<i32>} : memref<8x8x48xf32, #tpu.memory_space<vmem>>, vector<1x8x48xf32>,
    %88 = vector.extract_strided_slice %83 {offsets = [0, 0], sizes = [8, 32], strides = [1, 1]} : vector<8x48xf32> to vector<8x32xf32>
    %c8_i32 = arith.constant 8 : i32
    %c0_56 = arith.constant 0 : index
    %c0_57 = arith.constant 0 : index
    %89 = vector.load %arg6[%c0_56, %c0_57] : memref<8x32xf32, #tpu.memory_space<vmem>>, vector<8x32xf32>
    tpu.vector_store %arg6[%c0_56, %c0_57], %88 {strides = array<i32>} : memref<8x32xf32, #tpu.memory_space<vmem>>, vector<8x32xf32>,
    %c0_58 = arith.constant 0 : index
    %c0_59 = arith.constant 0 : index
    %c0_60 = arith.constant 0 : index
    %90 = vector.load %arg7[%c0_58, %c0_59, %c0_60] : memref<8x8x48xf32, #tpu.memory_space<vmem>>, vector<8x8x48xf32>
    %91 = vector.shape_cast %90 : vector<8x8x48xf32> to vector<64x48xf32>
    %c0_61 = arith.constant 0 : index
    %c0_62 = arith.constant 0 : index
    %92 = vector.load %arg3[%c0_61, %c0_62] : memref<48x128xf32, #tpu.memory_space<vmem>>, vector<48x128xf32>
    %cst_63 = arith.constant dense<0.000000e+00> : vector<64x128xf32>
    %93 = tpu.matmul %91, %92, %cst_63 {dimension_numbers = #tpu.dot_dimension_numbers<[1], [0], [0], [1], [0, 0, 1, 1], [], []>} : vector<64x48xf32>, vector<48x128xf32>, vector<64x128xf32> -> vector<64x128xf32>
    %c0_64 = arith.constant 0 : index
    %c0_65 = arith.constant 0 : index
    %94 = vector.load %arg4[%c0_64, %c0_65] : memref<1x128xf32, #tpu.memory_space<vmem>>, vector<1x128xf32>
    %95 = vector.broadcast %94 : vector<1x128xf32> to vector<64x128xf32>
    %96 = arith.addf %93, %95 : vector<64x128xf32>
    %cst_66 = arith.constant dense<0xFF800000> : vector<64xf32>
    %97 = vector.multi_reduction <maximumf>, %96, %cst_66 [1] : vector<64x128xf32> to vector<64xf32>
    %98 = vector.shape_cast %97 : vector<64xf32> to vector<64x1xf32>
    %99 = vector.broadcast %98 : vector<64x1xf32> to vector<64x128xf32>
    %100 = arith.subf %96, %99 : vector<64x128xf32>
    %101 = math.exp %100 : vector<64x128xf32>
    %cst_67 = arith.constant dense<0.000000e+00> : vector<64xf32>
    %102 = vector.multi_reduction <add>, %101, %cst_67 [1] : vector<64x128xf32> to vector<64xf32>
    %103 = vector.shape_cast %102 : vector<64xf32> to vector<64x1xf32>
    %104 = math.log %103 : vector<64x1xf32>
    %105 = vector.broadcast %104 : vector<64x1xf32> to vector<64x128xf32>
    %106 = arith.subf %100, %105 : vector<64x128xf32>
    %107 = vector.shape_cast %106 : vector<64x128xf32> to vector<8x8x128xf32>
    %c0_68 = arith.constant 0 : index
    %c0_69 = arith.constant 0 : index
    %c0_70 = arith.constant 0 : index
    %108 = vector.load %arg5[%c0_68, %c0_69, %c0_70] : memref<8x8x128xf32, #tpu.memory_space<vmem>>, vector<8x8x128xf32>
    tpu.vector_store %arg5[%c0_68, %c0_69, %c0_70], %107 {strides = array<i32>} : memref<8x8x128xf32, #tpu.memory_space<vmem>>, vector<8x8x128xf32>,
    return
  }
}

</mosaic_0001>

<bundles_post_ra>
// kernel: rnn_sequence_forward.1
= control target key start
LH: loop header
LB: loop body
LE: loop exit
PB: predicated region body
PF: predicated region fallthrough
CT: control target
= control target key end

     0   :  { %12 = vsyncpa [#allocation4], 0  ;;  %v1287_v3 = vmov 0.0|0.0   ;;  %vm1288_vm0 = vmmov 0   ;;  %v1289_v6 = vmov 0.0   ;;  %s1522_s0 = inlined_call_operand.vmem [shape: f32[8,8,48], index: 0, kind: input, shape index: {}]   ;;  %s1523_s1 = inlined_call_operand.vmem [shape: f32[8,32], index: 1, kind: input, shape index: {}]   ;;  %s1524_s2 = inlined_call_operand.vmem [shape: f32[32,48], index: 2, kind: input, shape index: {}]   ;;  %s1525_s3 = inlined_call_operand.vmem [shape: f32[48,128], index: 3, kind: input, shape index: {}]   ;;  %s1526_s4 = inlined_call_operand.vmem [shape: f32[1,128], index: 4, kind: input, shape index: {}]   ;;  %s1527_s5 = inlined_call_operand.hbm [shape: f32[8,8,128], index: 5, kind: output, shape index: {0}]   ;;  %s1528_s6 = inlined_call_operand.hbm [shape: f32[8,32], index: 6, kind: output, shape index: {1}]  }
   0x1   :  { %v26_v0 = vld [vmem:[%s1524_s2] sm:$0xff]  ;;  %v27_v1 = vld [vmem:[%s1524_s2 + $0x8] sm:$0xff]  ;;  %v28_v2 = vld [vmem:[%s1524_s2 + $0x10] sm:$0xff]  ;;  %1140 = vmatprep.subr.bf16.mxu1 %v1287_v3  ;;  %1036 = vmatprep.mubr.msk.f32.mxu1 %vm1288_vm0, %v1289_v6 }
   0x2   :  { %v1339_v4 = vpack.c.bf16 %v27_v1, %v26_v0  ;;  %v29_v5 = vld [vmem:[%s1524_s2 + $0x18] sm:$0xff]  ;;  %1152 = vmatprep.subr.bf16.mxu0 %v1287_v3  ;;  %1058 = vmatprep.mubr.msk.f32.mxu0 %vm1288_vm0, %v1289_v6 }
   0x3   :  { %13 = vsyncpa [#allocation6], 0  ;;  %v1350_v7 = vpack.c.bf16 %v29_v5, %v28_v2  ;;  %v24_v8 = vld [vmem:[%s1523_s1] sm:$0xff]  ;;  %vm30_vm1 = vcmask 261120   ;;  %vm105_vm2 = vcmask 392192   ;;  %v951_v13 = vld [vmem:[%s1522_s0 + $0x8] sm:$0xff] }
   0x4   :  { %1142 = vmatpush3.bf16.msra.mxu1 %v1339_v4  ;;  %1154 = vmatpush3.bf16.msra.mxu0 %v1339_v4  ;;  %v25_v9 = vld [vmem:[%s1522_s0] sm:$0xff]  ;;  %v953_v17 = vld [vmem:[%s1522_s0 + $0x10] sm:$0xff]  ;;  %v955_v21 = vld [vmem:[%s1522_s0 + $0x18] sm:$0xff] }
   0x5   :  { %1143 = vmatprep.subr.bf16.mxu1 %v1287_v3  ;;  %1155 = vmatprep.subr.bf16.mxu0 %v1287_v3  ;;  %v957_v25 = vld [vmem:[%s1522_s0 + $0x20] sm:$0xff]  ;;  %v691_v30 = vld [vmem:[%s1525_s3 + $0x8] sm:$0xff]  ;;  %v692_v33 = vld [vmem:[%s1525_s3 + $0x10] sm:$0xff] }
   0x6   :  { %v690_v29 = vld [vmem:[%s1525_s3] sm:$0xff]  ;;  %v959_v32 = vld [vmem:[%s1522_s0 + $0x28] sm:$0xff]  ;;  %v693_v34 = vld [vmem:[%s1525_s3 + $0x18] sm:$0xff] }
   0x7   :  { %v1188_v31 = vpack.c.bf16 %v691_v30, %v690_v29  ;;  %v1192_v38 = vpack.c.bf16 %v693_v34, %v692_v33  ;;  %v694_v39 = vld [vmem:[%s1525_s3 + $0x20] sm:$0xff]  ;;  %v695_v40 = vld [vmem:[%s1525_s3 + $0x28] sm:$0xff]  ;;  %v961_v48 = vld [vmem:[%s1522_s0 + $0x30] sm:$0xff] }
   0x8   :  { %1145 = vmatpush3.bf16.msra.mxu1 %v1350_v7  ;;  %1157 = vmatpush3.bf16.msra.mxu0 %v1350_v7  ;;  %v1196_v42 = vpack.c.bf16 %v695_v40, %v694_v39  ;;  %v965_v52 = vld [vmem:[%s1526_s4] ss:$0 sm:$0xff]  ;;  %v963_v2 = vld [vmem:[%s1522_s0 + $0x38] sm:$0xff]  ;;  %s1290_s0 = smov [#allocation5]  }
   0x9   :  { %1146 = vmatprep.subr.bf16.mxu1 %v1287_v3  ;;  %1164 = vmatprep.subr.bf16.mxu0 %v1287_v3  ;;  %s938_s7 = sshll.u32 %s1290_s0, 4  ;;  %s939_s7 = int_to_ptr.vmem [resolvable:$true] %s938_s7 }
   0xa   :  { %s1239_s8 = scalar_lea.vmem %s939_s7, 128  ;;  %p1244_p1 = scmp.lt.s32.totalorder %s939_s7, %s939_s7 }
   0xb   :  { %1037 = vmatmul.mubr.msk.f32.vlgmr.msra.gmra.mrb[0].mxu1 %vm30_vm1, %v24_v8  ;;  %p1240_p0 = scmp.ne.s32.totalorder %s939_s7, %s1239_s8  ;;  %p1245_p2 = scmp.lt.s32.totalorder %s1239_s8, %s1239_s8 }
   0xc   :  { %1148 = vmatpush3.bf16.msra.mxu1 %v1339_v4  ;;  %1047 = vmatprep.mubr.msk.f32.mxu1 %vm1288_vm0, %v1289_v6 }
   0xd   :  { %1149 = vmatprep.subr.bf16.mxu1 %v1287_v3  ;;  %p1246_p3 = por %p1245_p2, %p1244_p1 }
   0xf   :  { %p1247_p4 = pnand %p1246_p3, %p1240_p0 }
  0x10   :  { %1151 = vmatpush3.bf16.msra.mxu1 %v1350_v7 }
  0x11   :  { %1158 = vmatprep.subr.bf16.mxu1 %v1287_v3 }
  0xde   :  { %v100_v10 = vpop.f32.mrb[0].mxu1 }
  0xdf   :  { %v104_v11 = vadd.f32 %v100_v10, %v25_v9  ;;  %v1038_v12 = vpop.f32.mrb[1].mxu1 }
  0xe1   :  { %106 = vst.msk [vmem:[#allocation2] sm:$0xff] %vm105_vm2, %v104_v11  ;;  %1048 = vmatmul.mubr.msk.f32.vlgmr.msra.gmra.mrb[2].mxu1 %vm30_vm1, %v104_v11 }
  0xe2   :  { %1160 = vmatpush3.bf16.msra.mxu1 %v1339_v4  ;;  %1069 = vmatprep.mubr.msk.f32.mxu1 %vm1288_vm0, %v1289_v6 }
  0xe3   :  { %1161 = vmatprep.subr.bf16.mxu1 %v1287_v3 }
  0xe6   :  { %1163 = vmatpush3.bf16.msra.mxu1 %v1350_v7 }
  0xe7   :  { %1170 = vmatprep.subr.bf16.mxu1 %v1287_v3 }
  0xe8   :  { %v682_v41 = vld [vmem:[#allocation2] sm:$0xff] }
 0x1b4   :  { %v182_v14 = vpop.f32.mrb[2].mxu1 }
 0x1b5   :  { %v186_v15 = vadd.f32 %v951_v13, %v182_v14  ;;  %v1049_v16 = vpop.f32.mrb[3].mxu1 }
 0x1b7   :  { %188 = vst.msk [vmem:[#allocation2 + $0x8] sm:$0xff] %vm105_vm2, %v186_v15  ;;  %1059 = vmatmul.mubr.msk.f32.vlgmr.msra.gmra.mrb[0].mxu0 %vm30_vm1, %v186_v15 }
 0x1b8   :  { %1166 = vmatpush3.bf16.msra.mxu0 %v1339_v4  ;;  %1080 = vmatprep.mubr.msk.f32.mxu0 %vm1288_vm0, %v1289_v6 }
 0x1b9   :  { %1167 = vmatprep.subr.bf16.mxu0 %v1287_v3 }
 0x1bc   :  { %1169 = vmatpush3.bf16.msra.mxu0 %v1350_v7 }
 0x1bd   :  { %1176 = vmatprep.subr.bf16.mxu0 %v1287_v3 }
 0x1be   :  { %v683_v43 = vld [vmem:[#allocation2 + $0x8] sm:$0xff] }
 0x28a   :  { %v264_v18 = vpop.f32.mrb[0].mxu0 }
 0x28b   :  { %v268_v19 = vadd.f32 %v953_v17, %v264_v18  ;;  %v1060_v20 = vpop.f32.mrb[1].mxu0 }
 0x28d   :  { %270 = vst.msk [vmem:[#allocation2 + $0x10] sm:$0xff] %vm105_vm2, %v268_v19  ;;  %1070 = vmatmul.mubr.msk.f32.vlgmr.msra.gmra.mrb[4].mxu1 %vm30_vm1, %v268_v19 }
 0x28e   :  { %1172 = vmatpush3.bf16.msra.mxu1 %v1339_v4  ;;  %1091 = vmatprep.mubr.msk.f32.mxu1 %vm1288_vm0, %v1289_v6 }
 0x28f   :  { %1173 = vmatprep.subr.bf16.mxu1 %v1287_v3 }
 0x292   :  { %1175 = vmatpush3.bf16.msra.mxu1 %v1350_v7 }
 0x293   :  { %1182 = vmatprep.subr.bf16.mxu1 %v1287_v3 }
 0x294   :  { %v684_v44 = vld [vmem:[#allocation2 + $0x10] sm:$0xff] }
 0x360   :  { %v346_v22 = vpop.f32.mrb[4].mxu1 }
 0x361   :  { %v350_v23 = vadd.f32 %v955_v21, %v346_v22  ;;  %v1071_v24 = vpop.f32.mrb[5].mxu1 }
 0x363   :  { %352 = vst.msk [vmem:[#allocation2 + $0x18] sm:$0xff] %vm105_vm2, %v350_v23  ;;  %1081 = vmatmul.mubr.msk.f32.vlgmr.msra.gmra.mrb[2].mxu0 %vm30_vm1, %v350_v23 }
 0x364   :  { %1178 = vmatpush3.bf16.msra.mxu0 %v1339_v4  ;;  %1102 = vmatprep.mubr.msk.f32.mxu0 %vm1288_vm0, %v1289_v6 }
 0x365   :  { %1179 = vmatprep.subr.bf16.mxu0 %v1287_v3 }
 0x368   :  { %1181 = vmatpush3.bf16.msra.mxu0 %v1350_v7 }
 0x369   :  { %1189 = vmatprep.subr.bf16.mxu0 %v1188_v31 }
 0x36a   :  { %v685_v45 = vld [vmem:[#allocation2 + $0x18] sm:$0xff] }
 0x436   :  { %v428_v26 = vpop.f32.mrb[2].mxu0 }
 0x437   :  { %v432_v27 = vadd.f32 %v957_v25, %v428_v26  ;;  %v1082_v28 = vpop.f32.mrb[3].mxu0 }
 0x439   :  { %434 = vst.msk [vmem:[#allocation2 + $0x20] sm:$0xff] %vm105_vm2, %v432_v27  ;;  %1092 = vmatmul.mubr.msk.f32.vlgmr.msra.gmra.mrb[6].mxu1 %vm30_vm1, %v432_v27 }
 0x43a   :  { %1184 = vmatpush3.bf16.msra.mxu1 %v1339_v4  ;;  %1113 = vmatprep.mubr.msk.f32.mxu1 %vm1288_vm0, %v1289_v6 }
 0x43b   :  { %1185 = vmatprep.subr.bf16.mxu1 %v1287_v3 }
 0x43e   :  { %1187 = vmatpush3.bf16.msra.mxu1 %v1350_v7 }
 0x440   :  { %v686_v46 = vld [vmem:[#allocation2 + $0x20] sm:$0xff] }
 0x50c   :  { %v510_v35 = vpop.f32.mrb[6].mxu1 }
 0x50d   :  { %v514_v36 = vadd.f32 %v959_v32, %v510_v35  ;;  %v1093_v37 = vpop.f32.mrb[7].mxu1 }
 0x50f   :  { %516 = vst.msk [vmem:[#allocation2 + $0x28] sm:$0xff] %vm105_vm2, %v514_v36  ;;  %1103 = vmatmul.mubr.msk.f32.vlgmr.msra.gmra.mrb[4].mxu0 %vm30_vm1, %v514_v36 }
 0x510   :  { %1191 = vmatpush3.bf16.msra.mxu0 %v1188_v31  ;;  %1128 = vmatprep.mubr.msk.f32.mxu0 %vm105_vm2, %v682_v41 }
 0x511   :  { %1193 = vmatprep.subr.bf16.mxu0 %v1192_v38 }
 0x514   :  { %1195 = vmatpush3.bf16.msra.mxu0 %v1192_v38 }
 0x515   :  { %1197 = vmatprep.subr.bf16.mxu0 %v1196_v42 }
 0x516   :  { %v687_v47 = vld [vmem:[#allocation2 + $0x28] sm:$0xff] }
 0x518   :  { %1199 = vmatpush3.bf16.msra.mxu0 %v1196_v42 }
 0x51b   :  { %1129 = vmatmul.mubr.msk.f32.vlgmr.msra.gmra.mrb[6].mxu0 %vm105_vm2, %v683_v43 }
 0x51c   :  { %1131 = vmatprep.mubr.msk.f32.mxu0 %vm105_vm2, %v684_v44 }
 0x51f   :  { %1132 = vmatmul.mubr.msk.f32.gmra.mrb[8].mxu0 %vm105_vm2, %v685_v45 }
 0x520   :  { %1134 = vmatprep.mubr.msk.f32.mxu0 %vm105_vm2, %v686_v46 }
 0x523   :  { %1135 = vmatmul.mubr.msk.f32.gmra.mrb[10].mxu0 %vm105_vm2, %v687_v47 }
 0x5e2   :  { %v592_v49 = vpop.f32.mrb[4].mxu0 }
 0x5e3   :  { %v596_v50 = vadd.f32 %v961_v48, %v592_v49  ;;  %v1104_v51 = vpop.f32.mrb[5].mxu0 }
 0x5e5   :  { %598 = vst.msk [vmem:[#allocation2 + $0x30] sm:$0xff] %vm105_vm2, %v596_v50  ;;  %1114 = vmatmul.mubr.msk.f32.vlgmr.msra.gmra.mrb[8].mxu1 %vm30_vm1, %v596_v50 }
 0x5ec   :  { %v688_v53 = vld [vmem:[#allocation2 + $0x30] sm:$0xff] }
 0x5ed   :  { %1137 = vmatprep.mubr.msk.f32.mxu0 %vm105_vm2, %v688_v53 }
 0x5ee   :  { %v1130_v54 = vpop.f32.mrb[6].mxu0 }
 0x5ef   :  { %v799_v55 = vadd.f32 %v1130_v54, %v965_v52  ;;  %v793_v56 = vpop.f32.mrb[7].mxu0 }
 0x5f0   :  { %v794_v58 = vadd.f32 %v965_v52, %v793_v56 }
 0x5f1   :  { %834 = vmax.xlane.f32.xlu0 %v799_v55 }
 0x5f2   :  { %v1133_v57 = vpop.f32.mrb[8].mxu0 }
 0x5f3   :  { %v809_v59 = vadd.f32 %v1133_v57, %v965_v52  ;;  %v803_v60 = vpop.f32.mrb[9].mxu0 }
 0x5f4   :  { %v804_v62 = vadd.f32 %v965_v52, %v803_v60 }
 0x5f5   :  { %838 = vmax.xlane.f32.xlu1 %v809_v59  ;;  %832 = vmax.xlane.f32.xlu0 %v794_v58 }
 0x5f6   :  { %v1136_v61 = vpop.f32.mrb[10].mxu0 }
 0x5f7   :  { %v813_v63 = vpop.f32.mrb[11].mxu0  ;;  %v819_v1 = vadd.f32 %v1136_v61, %v965_v52 }
 0x5f8   :  { %v814_v0 = vadd.f32 %v965_v52, %v813_v63 }
 0x5f9   :  { %836 = vmax.xlane.f32.xlu1 %v804_v62 }
 0x5fa   :  { %840 = vmax.xlane.f32.xlu0 %v814_v0 }
 0x5fd   :  { %842 = vmax.xlane.f32.xlu1 %v819_v1 }
 0x67e   :  { %v835_v7 = vpop.xlane.xlu0 %834 }
 0x67f   :  { %v1466_v11 = vsub.f32 %v799_v55, %v835_v7 }
 0x681   :  { %v858_v13 = vmul.f32 1.442695, %v1466_v11 }
 0x682   :  { %v839_v8 = vpop.xlane.xlu1 %838  ;;  %v833_v9 = vpop.xlane.xlu0 %832 }
 0x683   :  { %v1468_v12 = vsub.f32 %v794_v58, %v833_v9  ;;  %v1471_v14 = vsub.f32 %v809_v59, %v839_v8  ;;  %1207 = vpow2.f32 %v858_v13 }
 0x685   :  { %v856_v15 = vmul.f32 1.442695, %v1468_v12  ;;  %v862_v19 = vmul.f32 1.442695, %v1471_v14 }
 0x686   :  { %v837_v10 = vpop.xlane.xlu1 %836 }
 0x687   :  { %v1474_v16 = vsub.f32 %v804_v62, %v837_v10  ;;  %v841_v18 = vpop.xlane.xlu0 %840  ;;  %1209 = vpow2.f32 %v856_v15 }
 0x688   :  { %v1480_v22 = vsub.f32 %v814_v0, %v841_v18  ;;  %1211 = vpow2.f32 %v862_v19 }
 0x689   :  { %v860_v21 = vmul.f32 1.442695, %v1474_v16 }
 0x68a   :  { %v843_v17 = vpop.xlane.xlu1 %842  ;;  %v864_v25 = vmul.f32 1.442695, %v1480_v22 }
 0x68b   :  { %v1477_v20 = vsub.f32 %v819_v1, %v843_v17  ;;  %1213 = vpow2.f32 %v860_v21 }
 0x68d   :  { %v866_v23 = vmul.f32 1.442695, %v1477_v20  ;;  %v1208_v29 = vpop.eup %1207 }
 0x68f   :  { %1215 = vpow2.f32 %v866_v23 }
 0x690   :  { %1217 = vpow2.f32 %v864_v25 }
 0x691   :  { %v1210_v30 = vpop.eup %1209 }
 0x692   :  { %v1212_v31 = vpop.eup %1211 }
 0x695   :  { %v1214_v32 = vpop.eup %1213 }
 0x699   :  { %v1216_v33 = vpop.eup %1215 }
 0x69a   :  { %v1218_v34 = vpop.eup %1217 }
 0x6b8   :  { %v674_v3 = vpop.f32.mrb[8].mxu1 }
 0x6b9   :  { %v678_v4 = vadd.f32 %v963_v2, %v674_v3  ;;  %v1115_v5 = vpop.f32.mrb[9].mxu1 }
 0x6bb   :  { %680 = vst.msk [vmem:[#allocation2 + $0x38] sm:$0xff] %vm105_vm2, %v678_v4 }
 0x6bc   :  { %681 = vst.msk [vmem:[#allocation5] sm:$0xff] %vm30_vm1, %v678_v4 }
 0x6c2   :  { %v689_v6 = vld [vmem:[#allocation2 + $0x38] sm:$0xff] }
 0x6c3   :  { %1138 = vmatmul.mubr.msk.f32.gmra.mrb[12].mxu0 %vm105_vm2, %v689_v6 }
 0x796   :  { %v1139_v24 = vpop.f32.mrb[12].mxu0 }
 0x797   :  { %v829_v26 = vadd.f32 %v1139_v24, %v965_v52  ;;  %v823_v27 = vpop.f32.mrb[13].mxu0 }
 0x798   :  { %v824_v28 = vadd.f32 %v965_v52, %v823_v27 }
 0x799   :  { %846 = vmax.xlane.f32.xlu1 %v829_v26 }
 0x79a   :  { %844 = vmax.xlane.f32.xlu0 %v824_v28 }
 0x79d   :  { %874 = vadd.xlane.f32.xlu1 %v1208_v29 }
 0x79e   :  { %872 = vadd.xlane.f32.xlu0 %v1210_v30 }
 0x7a1   :  { %878 = vadd.xlane.f32.xlu1 %v1212_v31 }
 0x7a2   :  { %876 = vadd.xlane.f32.xlu0 %v1214_v32 }
 0x7a5   :  { %882 = vadd.xlane.f32.xlu1 %v1216_v33 }
 0x7a6   :  { %880 = vadd.xlane.f32.xlu0 %v1218_v34 }
 0x826   :  { %v847_v35 = vpop.xlane.xlu1 %846 }
 0x827   :  { %v1484_v36 = vsub.f32 %v829_v26, %v847_v35  ;;  %v845_v37 = vpop.xlane.xlu0 %844 }
 0x828   :  { %v1486_v38 = vsub.f32 %v824_v28, %v845_v37 }
 0x829   :  { %v870_v39 = vmul.f32 1.442695, %v1484_v36 }
 0x82a   :  { %v868_v40 = vmul.f32 1.442695, %v1486_v38  ;;  %v875_v41 = vpop.xlane.xlu1 %874 }
 0x82b   :  { %1219 = vpow2.f32 %v870_v39  ;;  %v873_v42 = vpop.xlane.xlu0 %872 }
 0x82c   :  { %1221 = vpow2.f32 %v868_v40 }
 0x82d   :  { %1223 = vlog2.f32 %v875_v41 }
 0x82e   :  { %1225 = vlog2.f32 %v873_v42  ;;  %v879_v43 = vpop.xlane.xlu1 %878 }
 0x82f   :  { %1227 = vlog2.f32 %v879_v43  ;;  %v877_v44 = vpop.xlane.xlu0 %876 }
 0x830   :  { %1229 = vlog2.f32 %v877_v44 }
 0x832   :  { %v883_v45 = vpop.xlane.xlu1 %882 }
 0x833   :  { %1231 = vlog2.f32 %v883_v45  ;;  %v881_v46 = vpop.xlane.xlu0 %880 }
 0x834   :  { %1233 = vlog2.f32 %v881_v46 }
 0x835   :  { %v1220_v47 = vpop.eup %1219 }
 0x836   :  { %v1222_v48 = vpop.eup %1221  ;;  %886 = vadd.xlane.f32.xlu1 %v1220_v47 }
 0x837   :  { %v1224_v49 = vpop.eup %1223  ;;  %884 = vadd.xlane.f32.xlu0 %v1222_v48 }
 0x838   :  { %v1226_v50 = vpop.eup %1225  ;;  %v891_v51 = vmul.f32 0.6931472, %v1224_v49 }
 0x839   :  { %v1228_v52 = vpop.eup %1227  ;;  %v889_v53 = vmul.f32 0.6931472, %v1226_v50 }
 0x83a   :  { %v1230_v54 = vpop.eup %1229  ;;  %v905_v55 = vsub.f32 %v1466_v11, %v891_v51  ;;  %v895_v56 = vmul.f32 0.6931472, %v1228_v52 }
 0x83b   :  { %v904_v57 = vsub.f32 %v1468_v12, %v889_v53  ;;  %v893_v58 = vmul.f32 0.6931472, %v1230_v54 }
 0x83c   :  { %913 = vst [vmem:[#allocation3 + $0x8] sm:$0xff] %v905_v55  ;;  %v907_v59 = vsub.f32 %v1471_v14, %v895_v56 }
 0x83d   :  { %v1232_v60 = vpop.eup %1231  ;;  %912 = vst [vmem:[#allocation3] sm:$0xff] %v904_v57  ;;  %v906_v61 = vsub.f32 %v1474_v16, %v893_v58 }
 0x83e   :  { %v1234_v62 = vpop.eup %1233  ;;  %915 = vst [vmem:[#allocation3 + $0x18] sm:$0xff] %v907_v59  ;;  %v899_v63 = vmul.f32 0.6931472, %v1232_v60 }
 0x83f   :  { %914 = vst [vmem:[#allocation3 + $0x10] sm:$0xff] %v906_v61  ;;  %v897_v0 = vmul.f32 0.6931472, %v1234_v62 }
 0x840   :  { %v909_v1 = vsub.f32 %v1477_v20, %v899_v63 }
 0x841   :  { %v908_v2 = vsub.f32 %v1480_v22, %v897_v0 }
 0x842   :  { %917 = vst [vmem:[#allocation3 + $0x28] sm:$0xff] %v909_v1 }
 0x843   :  { %916 = vst [vmem:[#allocation3 + $0x20] sm:$0xff] %v908_v2 }
 0x844   :  { %1250 = shalt.err (!%p1247_p4)
}
 0x845   :  { %s1251_s11 = scalar_lea.hbm %s1528_s6, 128 }
 0x846   :  { %p1252_p5 = scmp.ne.s32.totalorder %s1528_s6, %s1251_s11  ;;  %p1255_p6 = scmp.lt.u32.totalorder %s1251_s11, %s1528_s6 }
 0x848   :  { %p1257_p7 = pnand %p1255_p6, %p1252_p5 }
 0x84a   :  { %1260 = shalt.err (!%p1257_p7)
}
 0x84b   :  { %941 = dma.vmem_to_hbm [thread:$0]  %s939_s7, 128, %s1528_s6, [#allocation6]  }
 0x84c   :  { %s1291_s18 = smov [#allocation3]  }
 0x84d   :  { %s925_s19 = sshll.u32 %s1291_s18, 4  ;;  %s926_s19 = int_to_ptr.vmem [resolvable:$true] %s925_s19 }
 0x84e   :  { %s1261_s20 = scalar_lea.vmem %s926_s19, 1024  ;;  %p1266_p9 = scmp.lt.s32.totalorder %s926_s19, %s926_s19 }
 0x84f   :  { %p1262_p8 = scmp.ne.s32.totalorder %s926_s19, %s1261_s20  ;;  %p1267_p10 = scmp.lt.s32.totalorder %s1261_s20, %s1261_s20 }
 0x851   :  { %p1268_p11 = por %p1267_p10, %p1266_p9 }
 0x853   :  { %p1269_p12 = pnand %p1268_p11, %p1262_p8 }
 0x8c3   :  { %v887_v3 = vpop.xlane.xlu1 %886 }
 0x8c4   :  { %1235 = vlog2.f32 %v887_v3  ;;  %v885_v4 = vpop.xlane.xlu0 %884 }
 0x8c5   :  { %1237 = vlog2.f32 %v885_v4 }
 0x8ce   :  { %v1236_v5 = vpop.eup %1235 }
 0x8cf   :  { %v1238_v6 = vpop.eup %1237  ;;  %v903_v7 = vmul.f32 0.6931472, %v1236_v5 }
 0x8d0   :  { %v901_v8 = vmul.f32 0.6931472, %v1238_v6 }
 0x8d1   :  { %v911_v9 = vsub.f32 %v1484_v36, %v903_v7 }
 0x8d2   :  { %v910_v10 = vsub.f32 %v1486_v38, %v901_v8 }
 0x8d3   :  { %919 = vst [vmem:[#allocation3 + $0x38] sm:$0xff] %v911_v9 }
 0x8d4   :  { %918 = vst [vmem:[#allocation3 + $0x30] sm:$0xff] %v910_v10 }
 0x8d5   :  { %1272 = shalt.err (!%p1269_p12)
}
 0x8d6   :  { %s1273_s22 = scalar_lea.hbm %s1527_s5, 1024 }
 0x8d7   :  { %p1274_p13 = scmp.ne.s32.totalorder %s1527_s5, %s1273_s22  ;;  %p1277_p0 = scmp.lt.u32.totalorder %s1273_s22, %s1527_s5 }
 0x8d9   :  { %p1279_p1 = pnand %p1277_p0, %p1274_p13 }
 0x8db   :  { %1282 = shalt.err (!%p1279_p1)
}
 0x8dc   :  { %s1292_s27 = smov 128   ;;  %s1293_s28 = smov 8  }
 0x8dd   :  { %931 = dma.vmem_to_hbm [thread:$0]  %s926_s19, 1024, %s1527_s5, [#allocation4], %s1292_s27, %s1292_s27, %s1293_s28  }
 0x8de   :  { %1283 = dma.done.wait [#allocation4], 1024  }
 0x8df   :  { %1284 = vsyncadd [#allocation4], 4294966272 }
 0x8e0   :  { %1285 = dma.done.wait [#allocation6], 128  }
 0x8e1   :  { %1286 = vsyncadd [#allocation6], 4294967168 }
 0x8e2   :  { %948 = vsyncpa [#allocation4], 1 }
 0x8e3   :  { %949 = vsyncpa [#allocation6], 1 }

</bundles_post_ra>
